<compile_context>
chip_gen: v5e
topology: v5e:2x2
jax: 0.10.0
libtpu: 0.0.40
codegen_flags: <defaults>
</compile_context>

<pallas_src>
import math

import jax
import jax.numpy as jnp
from jax.experimental import pallas as pl
from jax.experimental.pallas import tpu as pltpu


def _round_up(x, m):
    return ((x + m - 1) // m) * m


def _cde_partial_kernel(beta_ref, z_ref, out_ref):
    """Writes the (8, W) lane partial of sum(beta * (beta - 2*z)) for this block."""
    beta = beta_ref[...].astype(jnp.float32)          # (bm, W)
    z = z_ref[...].astype(jnp.float32)                # (bm, W) or (1, W) -> broadcast
    prod = beta * (beta - 2.0 * z)
    bm, w = beta_ref.shape
    # Fold the sublane-row groups with pure elementwise vreg adds; the final
    # cross-lane reduction happens once, outside the kernel.
    out_ref[...] = jnp.sum(prod.reshape(bm // 8, 8, w), axis=0)


def cde_loss(beta, z_basis, shrink_factor=1.0,
             target_block_bytes=4 * 1024 * 1024):
    """Pallas TPU implementation of deepcde cde_loss.forward.

    beta:     [B, n_basis]
    z_basis:  [B, n_basis], [1, n_basis] or [n_basis]  (expand_as semantics)
    returns:  scalar float32 loss
    """
    beta = jnp.asarray(beta)
    z = jnp.asarray(z_basis)
    B, n = beta.shape

    # ---- canonicalize z: shared row [1, n] or full [B, n] --------------------
    if z.ndim == 1:
        z = z.reshape(1, n)
    if z.shape == (1, n):
        z_shared = True
    elif z.shape == (B, n):
        z_shared = False
    else:
        raise ValueError(
            f"z_basis shape {z.shape} is not expandable to beta shape {beta.shape}")

    # ---- lane-dense repack: never present masked / narrow lanes --------------
    # NOTE: the reshapes below are free views only for the default row-major
    # layout; a non-default input layout would insert an XLA copy (perf-only).
    if z_shared:
        W = math.lcm(n, 128)
        if W <= 4096:
            rows_per_chunk = W // n
            B_pad_rows = _round_up(B, rows_per_chunk)
            wb = beta
            if B_pad_rows != B:
                wb = jnp.pad(wb, ((0, B_pad_rows - B), (0, 0)))   # zero rows -> 0
            work_beta = wb.reshape(B_pad_rows // rows_per_chunk, W)
            work_z = jnp.tile(z, (1, rows_per_chunk)) if rows_per_chunk > 1 else z
        else:
            # lcm too wide to be a useful lane width: pad the lane dim instead
            # (padded beta lanes are zero -> contribute 0 regardless of z).
            W = _round_up(n, 128)
            work_beta = jnp.pad(beta, ((0, 0), (0, W - n)))
            work_z = jnp.pad(z, ((0, 0), (0, W - n)))
        z_block_shared = True
    else:
        # Full z: flatten both, zero-pad the element count to a multiple of 128,
        # reshape to (-1, 128).  Padded elements contribute exactly 0.
        W = 128
        total = B * n
        total_pad = _round_up(total, W)
        fb = beta.reshape(-1)
        fz = z.reshape(-1)
        if total_pad != total:
            fb = jnp.pad(fb, (0, total_pad - total))
            fz = jnp.pad(fz, (0, total_pad - total))
        work_beta = fb.reshape(-1, W)
        work_z = fz.reshape(-1, W)
        z_block_shared = False

    # ---- row tiling: multi-MiB blocks, rows multiple of 8, zero-row padding --
    R = work_beta.shape[0]
    itemsize = jnp.dtype(work_beta.dtype).itemsize
    rows_target = max(8, target_block_bytes // (W * itemsize))
    bm = _round_up(min(rows_target, R), 8)
    R_pad = _round_up(R, bm)
    if R_pad != R:
        work_beta = jnp.pad(work_beta, ((0, R_pad - R), (0, 0)))
        if not z_block_shared:
            work_z = jnp.pad(work_z, ((0, R_pad - R), (0, 0)))

    grid = (R_pad // bm,)

    beta_spec = pl.BlockSpec((bm, W), lambda i: (i, 0))
    if z_block_shared:
        z_spec = pl.BlockSpec((1, W), lambda i: (0, 0))       # resident shared row
    else:
        z_spec = pl.BlockSpec((bm, W), lambda i: (i, 0))

    # Per-block (8, W) lane partials; grid axis is "parallel" so 2-TensorCore
    # parts (v7x) can shard the blocks across cores with no carried state.
    partials = pl.pallas_call(
        _cde_partial_kernel,
        out_shape=jax.ShapeDtypeStruct((grid[0], 8, W), jnp.float32),
        grid_spec=pltpu.PrefetchScalarGridSpec(
            num_scalar_prefetch=0,
            grid=grid,
            in_specs=[beta_spec, z_spec],
            out_specs=pl.BlockSpec((None, 8, W), lambda i: (i, 0, 0)),
        ),
        compiler_params=pltpu.CompilerParams(
            dimension_semantics=("parallel",),
            vmem_limit_bytes=32 * 1024 * 1024),
    )(work_beta, work_z)

    total = jnp.sum(partials)     # tiny cross-block + cross-lane reduce
    # fold the cancelled "+1"s, the batch mean and the shrink factor here
    return (total / jnp.float32(B) - jnp.float32(1.0)) / jnp.float32(shrink_factor)


def cde_loss_ref(beta, z_basis, shrink_factor=1.0):
    beta = jnp.asarray(beta).astype(jnp.float32)
    z = jnp.broadcast_to(jnp.asarray(z_basis).astype(jnp.float32), beta.shape)
    complexity_terms = jnp.sum(beta ** 2, axis=1) + 1.0
    fit_terms = jnp.sum(beta * z, axis=1) + 1.0
    return jnp.mean(complexity_terms - 2.0 * fit_terms) / shrink_factor


if __name__ == "__main__":
    key = jax.random.PRNGKey(0)
    keys = jax.random.split(key, 10)
    shrink_factor = 2.5

    def check(out, ref, tag, atol=1e-5, rtol=1e-5):
        out = jax.block_until_ready(out)
        assert jnp.allclose(out, ref, rtol=rtol, atol=atol), (tag, out, ref)

    # 1) full z_basis [B, n] (flatten-to-128 dense repack)
    B, n = 8, 32
    beta = jax.random.normal(keys[0], (B, n), dtype=jnp.float32)
    z_full = jax.random.normal(keys[1], (B, n), dtype=jnp.float32)
    check(cde_loss(beta, z_full, shrink_factor),
          cde_loss_ref(beta, z_full, shrink_factor), "full_z")

    # 2) shared z_basis row [1, n] and 1-D [n] (expand_as, no materialization)
    z_row = jax.random.normal(keys[2], (1, n), dtype=jnp.float32)
    check(cde_loss(beta, z_row, 1.0), cde_loss_ref(beta, z_row, 1.0), "shared_2d")
    check(cde_loss(beta, z_row[0], 1.0), cde_loss_ref(beta, z_row[0], 1.0), "shared_1d")

    # 3) ragged batch, full z (exercises zero element padding)
    B3 = 6
    beta3 = jax.random.normal(keys[3], (B3, n), dtype=jnp.float32)
    z3 = jax.random.normal(keys[4], (B3, n), dtype=jnp.float32)
    check(cde_loss(beta3, z3, shrink_factor),
          cde_loss_ref(beta3, z3, shrink_factor), "ragged")

    # 4) odd n with shared z (lcm lane-dense repack: W = lcm(12,128) = 384)
    beta4 = jax.random.normal(keys[5], (8, 12), dtype=jnp.float32)
    z4 = jax.random.normal(keys[6], (1, 12), dtype=jnp.float32)
    check(cde_loss(beta4, z4, shrink_factor),
          cde_loss_ref(beta4, z4, shrink_factor), "odd_n_lcm")

    # 5) n where the lcm is too wide -> lane-pad fallback (n=129 -> W=256)
    beta5 = jax.random.normal(keys[7], (8, 129), dtype=jnp.float32)
    z5 = jax.random.normal(keys[8], (1, 129), dtype=jnp.float32)
    check(cde_loss(beta5, z5, 1.0), cde_loss_ref(beta5, z5, 1.0), "lane_pad")

    # 6) multi-block grid with "parallel" semantics (tiny block size on purpose)
    beta6 = jax.random.normal(keys[9], (64, 32), dtype=jnp.float32)
    z6 = jax.random.normal(keys[0], (64, 32), dtype=jnp.float32)
    check(cde_loss(beta6, z6, shrink_factor, target_block_bytes=4096),
          cde_loss_ref(beta6, z6, shrink_factor), "multi_block")

    # 7) bf16 beta streamed in source precision, upcast in-vreg
    beta7 = jax.random.normal(keys[1], (8, 32), dtype=jnp.bfloat16)
    z7 = jax.random.normal(keys[2], (1, 32), dtype=jnp.bfloat16)
    check(cde_loss(beta7, z7, shrink_factor),
          cde_loss_ref(beta7, z7, shrink_factor), "bf16", atol=1e-3, rtol=1e-3)

    print("KERNEL_OK")
</pallas_src>

<mosaic_0001>
module attributes {stable_mosaic.version = 11 : i64} {
  func.func @_cde_partial_kernel(%arg0: i32, %arg1: memref<8x128xf32, #tpu.memory_space<vmem>>, %arg2: memref<8x128xf32, #tpu.memory_space<vmem>>, %arg3: memref<1x8x128xf32, #tpu.memory_space<vmem>>) attributes {dimension_semantics = [#tpu.dimension_semantics<parallel>], iteration_bounds = array<i64: 1>, scalar_prefetch = 0 : i64, scratch_operands = 0 : i64, tpu.core_type = #tpu.core_type<tc>, window_params = [{transform_indices = @transform_0, window_bounds = array<i64: 8, 128>}, {transform_indices = @transform_1, window_bounds = array<i64: 8, 128>}, {transform_indices = @transform_2, window_bounds = array<i64: 1, 8, 128>}]} {
    %c0 = arith.constant 0 : index
    %c0_0 = arith.constant 0 : index
    %0 = vector.load %arg1[%c0, %c0_0] : memref<8x128xf32, #tpu.memory_space<vmem>>, vector<8x128xf32>
    %c0_1 = arith.constant 0 : index
    %c0_2 = arith.constant 0 : index
    %1 = vector.load %arg2[%c0_1, %c0_2] : memref<8x128xf32, #tpu.memory_space<vmem>>, vector<8x128xf32>
    %cst = arith.constant 2.000000e+00 : f32
    %2 = vector.broadcast %cst : f32 to vector<8x128xf32>
    %3 = arith.mulf %2, %1 : vector<8x128xf32>
    %4 = arith.subf %0, %3 : vector<8x128xf32>
    %5 = arith.mulf %0, %4 : vector<8x128xf32>
    %6 = vector.shape_cast %5 : vector<8x128xf32> to vector<1x8x128xf32>
    %cst_3 = arith.constant dense<0.000000e+00> : vector<8x128xf32>
    %7 = vector.multi_reduction <add>, %6, %cst_3 [0] : vector<1x8x128xf32> to vector<8x128xf32>
    %c0_4 = arith.constant 0 : index
    %c0_5 = arith.constant 0 : index
    %c0_6 = arith.constant 0 : index
    %8 = vector.load %arg3[%c0_4, %c0_5, %c0_6] : memref<1x8x128xf32, #tpu.memory_space<vmem>>, vector<1x8x128xf32>
    %9 = vector.shape_cast %8 : vector<1x8x128xf32> to vector<8x128xf32>
    %10 = vector.shape_cast %7 : vector<8x128xf32> to vector<1x8x128xf32>
    tpu.vector_store %arg3[%c0_4, %c0_5, %c0_6], %10 {strides = array<i32>} : memref<1x8x128xf32, #tpu.memory_space<vmem>>, vector<1x8x128xf32>,
    return
  }
  func.func @transform_0(%arg0: i32) -> (i32, i32) {
    %c0_i32 = arith.constant 0 : i32
    %c0_i32_0 = arith.constant 0 : i32
    return %arg0, %c0_i32 : i32, i32
  }
  func.func @transform_1(%arg0: i32) -> (i32, i32) {
    %c0_i32 = arith.constant 0 : i32
    %c0_i32_0 = arith.constant 0 : i32
    return %arg0, %c0_i32 : i32, i32
  }
  func.func @transform_2(%arg0: i32) -> (i32, i32, i32) {
    %c0_i32 = arith.constant 0 : i32
    %c0_i32_0 = arith.constant 0 : i32
    %c0_i32_1 = arith.constant 0 : i32
    return %arg0, %c0_i32, %c0_i32_0 : i32, i32, i32
  }
}

</mosaic_0001>

<bundles_post_ra>
// kernel: tpu_custom_call.1
= control target key start
LH: loop header
LB: loop body
LE: loop exit
PB: predicated region body
PF: predicated region fallthrough
CT: control target
= control target key end

     0   :  { %7 = vsyncpa [#allocation3], 0  ;;  %s173_s0 = inlined_call_operand.hbm [shape: f32[8,128], index: 0, kind: input, shape index: {}]   ;;  %s174_s1 = inlined_call_operand.hbm [shape: f32[8,128], index: 1, kind: input, shape index: {}]   ;;  %s175_s2 = inlined_call_operand.hbm [shape: f32[1,8,128], index: 2, kind: output, shape index: {}]  }
   0x1   :  { %8 = vsyncpa [#allocation6], 0 }
   0x2   :  { %9 = vsyncpa [#allocation4], 0  ;;  %s15_s11 = sshll.u32 %s173_s0, 4  ;;  %s146_s12 = smov [#allocation2]   ;;  %s16_s11 = int_to_ptr.hbm [resolvable:$true] %s15_s11 }
   0x3   :  { %s17_s13 = sshll.u32 %s146_s12, 4  ;;  %s26_s16 = sshll.u32 %s174_s1, 4  ;;  %s18_s13 = int_to_ptr.vmem [resolvable:$true] %s17_s13  ;;  %s27_s16 = int_to_ptr.hbm [resolvable:$true] %s26_s16 }
   0x4   :  { %20 = dma.hbm_to_vmem [thread:$0]  %s16_s11, 128, %s18_s13, [#allocation3]  }
   0x5   :  { %s147_s17 = smov [#allocation5]  }
   0x6   :  { %s28_s18 = sshll.u32 %s147_s17, 4  ;;  %s29_s18 = int_to_ptr.vmem [resolvable:$true] %s28_s18 }
   0x7   :  { %31 = dma.hbm_to_vmem [thread:$0]  %s27_s16, 128, %s29_s18, [#allocation6]  }
   0x8   :  { %140 = dma.done.wait [#allocation3], 128  }
   0x9   :  { %141 = vsyncadd [#allocation3], 4294967168 }
   0xa   :  { %142 = dma.done.wait [#allocation6], 128  }
   0xb   :  { %143 = vsyncadd [#allocation6], 4294967168  ;;  %v40_v0 = vld [vmem:[#allocation2] sm:$0xff]  ;;  %v41_v1 = vld [vmem:[#allocation5] sm:$0xff]  ;;  %s148_s0 = smov [#allocation7]   ;;  %s54_s22 = sshll.u32 %s175_s2, 4  ;;  %s55_s22 = int_to_ptr.hbm [resolvable:$true] %s54_s22 }
   0xc   :  { %v42_v2 = vmul.f32 2.0, %v41_v1  ;;  %s52_s19 = sshll.u32 %s148_s0, 4  ;;  %s53_s19 = int_to_ptr.vmem [resolvable:$true] %s52_s19 }
   0xe   :  { %v43_v3 = vsub.f32 %v40_v0, %v42_v2 }
  0x10   :  { %v44_v4 = vmul.f32 %v43_v3, %v40_v0 }
  0x12   :  { %46 = vst [vmem:[#allocation7] sm:$0xff] %v44_v4 }
  0x13   :  { %57 = dma.vmem_to_hbm [thread:$0]  %s53_s19, 128, %s55_s22, [#allocation4]  }
  0x14   :  { %144 = dma.done.wait [#allocation4], 128  }
  0x15   :  { %145 = vsyncadd [#allocation4], 4294967168 }
  0x16   :  { %62 = vsyncpa [#allocation3], 1 }
  0x17   :  { %63 = vsyncpa [#allocation6], 1 }
  0x18   :  { %64 = vsyncpa [#allocation4], 1 }

</bundles_post_ra>
